<compile_context>
chip_gen: v7x
topology: tpu7x:2x2x1
jax: 0.10.0
libtpu: 0.0.40
codegen_flags: <defaults>
</compile_context>

<pallas_src>
import jax
import jax.numpy as jnp
from jax import lax
from jax.experimental import pallas as pl
from jax.experimental.pallas import tpu as pltpu

_BN_EPS = 1e-5
_LEAKY_SLOPE = 0.01


def _round_up(n, m):
    return ((n + m - 1) // m) * m


# ---------------------------------------------------------------------------
# Kernel: 4 fused Linear layers (BN pre-folded), transposed / lane-dense.
# ---------------------------------------------------------------------------
def _make_kernel(sub_b):
    def kernel(x_ref, w1_ref, b1_ref, w2_ref, b2_ref, w3_ref, b3_ref,
               w4c_ref, b4_ref, o_ref):
        tile_b = x_ref.shape[0]
        n_sub = tile_b // sub_b

        def leaky(h):
            # max(h, 0.01*h) == LeakyReLU(0.01) for slope < 1 (2 VALU ops, not 3).
            return jnp.maximum(h, _LEAKY_SLOPE * h)

        def body(s, carry):
            r0 = s * sub_b                                   # static after unroll
            # f32 -> bf16 cast happens in-kernel (no wrapper cast/pad pass).
            xb = x_ref[pl.ds(r0, sub_b), :].astype(jnp.bfloat16)   # (sub_b, F)

            # layer1: contract last dims of W1 (64,F) and x (sub_b,F) -> (64,sub_b)
            h = lax.dot_general(w1_ref[...], xb, (((1,), (1,)), ((), ())),
                                preferred_element_type=jnp.float32)
            h = leaky(h + b1_ref[...]).astype(jnp.bfloat16)        # dropout = id

            # layer2 (BN1 folded): (32,64) @ (64,sub_b)
            h = jnp.dot(w2_ref[...], h, preferred_element_type=jnp.float32)
            h = leaky(h + b2_ref[...]).astype(jnp.bfloat16)        # dropout = id

            # layer3 (BN2 folded): (16,32) @ (32,sub_b)
            h = jnp.dot(w3_ref[...], h, preferred_element_type=jnp.float32)
            h = leaky(h + b3_ref[...])                             # (16,sub_b) f32

            # layer4 (BN3 folded, 16 -> 1): VPU multiply + 16-row reduction,
            # lands directly in the lane-dense (1, sub_b) layout.
            y = jnp.sum(h * w4c_ref[...], axis=0, keepdims=True) + b4_ref[...]

            o_ref[:, pl.ds(r0, sub_b)] = y.astype(o_ref.dtype)
            return carry

        # Fully unrolled: static 128-aligned slices, activations stay in vregs.
        lax.fori_loop(0, n_sub, body, 0, unroll=True)

        # TODO(synk): training-mode BatchNorm (batch statistics) and dropout
        # masks are not implemented; this reproduces eval()-mode forward only.

    return kernel


# ---------------------------------------------------------------------------
# Host-side parameter prep (PyTorch layout: W (out, in), b (out, 1)).
# ---------------------------------------------------------------------------
def init_params(input_size, key):
    dims = [input_size, 64, 32, 16, 1]
    params = {}
    keys = jax.random.split(key, 8)
    for li in range(4):
        fan_in, fan_out = dims[li], dims[li + 1]
        scale = 1.0 / jnp.sqrt(jnp.float32(fan_in))
        params[f"w{li+1}"] = (
            jax.random.uniform(keys[2 * li], (fan_out, fan_in), jnp.float32, -1.0, 1.0) * scale)
        params[f"b{li+1}"] = (
            jax.random.uniform(keys[2 * li + 1], (fan_out, 1), jnp.float32, -1.0, 1.0) * scale)
    # BatchNorm1d params, perturbed so the folding actually exercises the math.
    for bi, c in zip((1, 2, 3), (64, 32, 16)):
        r = jnp.arange(c, dtype=jnp.float32)[None, :]
        params[f"g{bi}"] = jnp.ones((1, c), jnp.float32) + 0.01 * r
        params[f"be{bi}"] = 0.001 * r
        params[f"m{bi}"] = 0.002 * r
        params[f"v{bi}"] = jnp.ones((1, c), jnp.float32) + 0.005 * r
    return params


def fold_bn_params(params):
    """Fold eval-mode BN_i into layer_{i+1}'s weights/bias (exact for eval)."""
    folded = {"w1": params["w1"], "b1": params["b1"]}
    for i in (1, 2, 3):
        a = params[f"g{i}"] * jax.lax.rsqrt(params[f"v{i}"] + _BN_EPS)   # (1, c)
        shift = params[f"be{i}"] - params[f"m{i}"] * a                   # (1, c)
        w_next = params[f"w{i+1}"]                                       # (c_next, c)
        b_next = params[f"b{i+1}"]                                       # (c_next, 1)
        folded[f"w{i+1}"] = w_next * a                                   # scale columns
        folded[f"b{i+1}"] = b_next + w_next @ shift.reshape(-1, 1)
    return folded


# ---------------------------------------------------------------------------
# Wrapper: batch-tiled pallas_call.
# ---------------------------------------------------------------------------
def gold_price_nn_forward(x, params, *, tile_b=8192, sub_b=256):
    B, F = x.shape

    # Fold BN (f32); matmul weights in bf16, last-layer column + biases in f32.
    fp = fold_bn_params(params)
    w1 = fp["w1"].astype(jnp.bfloat16)
    w2 = fp["w2"].astype(jnp.bfloat16)
    w3 = fp["w3"].astype(jnp.bfloat16)
    w4c = fp["w4"].T.astype(jnp.float32)                   # (16, 1)
    b1, b2, b3, b4 = (fp[f"b{i}"].astype(jnp.float32) for i in (1, 2, 3, 4))

    # Tile selection: big tiles (amortize per-step cost), multiples of sub_b.
    sub_b = max(128, _round_up(int(sub_b), 128))
    needed = _round_up(B, sub_b)
    tile_b = max(sub_b, (min(int(tile_b), needed) // sub_b) * sub_b)
    if needed // tile_b < 2 and needed >= 2 * sub_b:
        # Keep >= 2 grid steps so ("parallel",) can use both v7x TensorCores.
        tile_b = _round_up(pl.cdiv(needed, 2), sub_b)
    b_pad = _round_up(B, tile_b)
    grid = (b_pad // tile_b,)

    x_in = x if b_pad == B else jnp.pad(x, ((0, b_pad - B), (0, 0)))

    operands = [x_in, w1, b1, w2, b2, w3, b3, w4c, b4]
    in_specs = [pl.BlockSpec((tile_b, F), lambda i: (i, 0))]
    in_specs += [pl.BlockSpec(a.shape, lambda i: (0, 0)) for a in operands[1:]]
    out_specs = pl.BlockSpec((1, tile_b), lambda i: (0, i))

    flops = int(2 * b_pad * (F * 64 + 64 * 32 + 32 * 16 + 16 * 1))
    bytes_accessed = int(
        b_pad * F * x_in.dtype.itemsize + b_pad * 4
        + sum(int(a.size) * a.dtype.itemsize for a in operands[1:]))

    out = pl.pallas_call(
        _make_kernel(sub_b),
        out_shape=jax.ShapeDtypeStruct((1, b_pad), jnp.float32),
        grid=grid,
        in_specs=in_specs,
        out_specs=out_specs,
        compiler_params=pltpu.CompilerParams(dimension_semantics=("parallel",)),
        cost_estimate=pl.CostEstimate(
            flops=flops, transcendentals=0, bytes_accessed=bytes_accessed),
    )(*operands)

    return out.reshape(b_pad, 1)[:B]


# ---------------------------------------------------------------------------
# Pure-JAX references for sanity checking.
# ---------------------------------------------------------------------------
def _leaky(h):
    return jnp.maximum(h, _LEAKY_SLOPE * h)


def _reference_forward_f32(x, p):
    """Original (unfolded, f32) PyTorch-semantics eval forward."""
    def bn(h, g, be, m, v):
        return (h - m) * (g * jax.lax.rsqrt(v + _BN_EPS)) + be
    h = bn(_leaky(x @ p["w1"].T + p["b1"].T), p["g1"], p["be1"], p["m1"], p["v1"])
    h = bn(_leaky(h @ p["w2"].T + p["b2"].T), p["g2"], p["be2"], p["m2"], p["v2"])
    h = bn(_leaky(h @ p["w3"].T + p["b3"].T), p["g3"], p["be3"], p["m3"], p["v3"])
    return h @ p["w4"].T + p["b4"].T


def _reference_forward_bf16(x, params):
    """Matches the kernel's folded/bf16, transposed numerics (modulo acc order)."""
    fp = fold_bn_params(params)
    hT = x.astype(jnp.bfloat16).T
    for i in (1, 2, 3):
        w = fp[f"w{i}"].astype(jnp.bfloat16)
        hT = jnp.dot(w, hT, preferred_element_type=jnp.float32) + fp[f"b{i}"]
        hT = _leaky(hT)
        if i < 3:
            hT = hT.astype(jnp.bfloat16)
    yT = fp["w4"].astype(jnp.float32) @ hT + fp["b4"]
    return yT.T


if __name__ == "__main__":
    batch = 8
    input_size = 32

    key = jax.random.PRNGKey(0)
    k_x, k_p = jax.random.split(key)
    x = jax.random.normal(k_x, (batch, input_size), dtype=jnp.float32)
    params = init_params(input_size, k_p)

    out = gold_price_nn_forward(x, params)
    out = jax.block_until_ready(out)

    assert out.shape == (batch, 1), out.shape

    ref_bf16 = _reference_forward_bf16(x, params)
    assert jnp.allclose(out, ref_bf16, atol=5e-3, rtol=5e-3), (out, ref_bf16)

    ref_f32 = _reference_forward_f32(x, params)
    assert jnp.allclose(out, ref_f32, atol=5e-2, rtol=5e-2), (out, ref_f32)

    print("KERNEL_OK")
</pallas_src>

<mosaic_0001>
module attributes {stable_mosaic.version = 11 : i64} {
  func.func @kernel(%arg0: i32, %arg1: memref<256x32xf32, #tpu.memory_space<vmem>>, %arg2: memref<64x32xbf16, #tpu.memory_space<vmem>>, %arg3: memref<64x1xf32, #tpu.memory_space<vmem>>, %arg4: memref<32x64xbf16, #tpu.memory_space<vmem>>, %arg5: memref<32x1xf32, #tpu.memory_space<vmem>>, %arg6: memref<16x32xbf16, #tpu.memory_space<vmem>>, %arg7: memref<16x1xf32, #tpu.memory_space<vmem>>, %arg8: memref<16x1xf32, #tpu.memory_space<vmem>>, %arg9: memref<1x1xf32, #tpu.memory_space<vmem>>, %arg10: memref<1x256xf32, #tpu.memory_space<vmem>>) attributes {dimension_semantics = [#tpu.dimension_semantics<parallel>], iteration_bounds = array<i64: 1>, scalar_prefetch = 0 : i64, scratch_operands = 0 : i64, tpu.core_type = #tpu.core_type<tc>, window_params = [{transform_indices = @transform_0, window_bounds = array<i64: 256, 32>}, {pipeline_mode = #tpu.pipeline_mode<synchronous>, transform_indices = @transform_1, window_bounds = array<i64: 64, 32>}, {pipeline_mode = #tpu.pipeline_mode<synchronous>, transform_indices = @transform_2, window_bounds = array<i64: 64, 1>}, {pipeline_mode = #tpu.pipeline_mode<synchronous>, transform_indices = @transform_3, window_bounds = array<i64: 32, 64>}, {pipeline_mode = #tpu.pipeline_mode<synchronous>, transform_indices = @transform_4, window_bounds = array<i64: 32, 1>}, {pipeline_mode = #tpu.pipeline_mode<synchronous>, transform_indices = @transform_5, window_bounds = array<i64: 16, 32>}, {pipeline_mode = #tpu.pipeline_mode<synchronous>, transform_indices = @transform_6, window_bounds = array<i64: 16, 1>}, {pipeline_mode = #tpu.pipeline_mode<synchronous>, transform_indices = @transform_7, window_bounds = array<i64: 16, 1>}, {pipeline_mode = #tpu.pipeline_mode<synchronous>, transform_indices = @transform_8, window_bounds = array<i64: 1, 1>}, {transform_indices = @transform_9, window_bounds = array<i64: 1, 256>}]} {
    %c0_i32 = arith.constant 0 : i32
    %c256_i32 = arith.constant 256 : i32
    %0 = arith.muli %c0_i32, %c256_i32 : i32
    %1 = arith.index_cast %0 : i32 to index
    %c0 = arith.constant 0 : index
    %2 = vector.load %arg1[%1, %c0] : memref<256x32xf32, #tpu.memory_space<vmem>>, vector<256x32xf32>
    %3 = arith.truncf %2 : vector<256x32xf32> to vector<256x32xbf16>
    %c0_0 = arith.constant 0 : index
    %c0_1 = arith.constant 0 : index
    %4 = vector.load %arg2[%c0_0, %c0_1] : memref<64x32xbf16, #tpu.memory_space<vmem>>, vector<64x32xbf16>
    %cst = arith.constant dense<0.000000e+00> : vector<64x256xf32>
    %5 = tpu.matmul %4, %3, %cst {dimension_numbers = #tpu.dot_dimension_numbers<[1], [1], [0], [0], [0, 0, 1, 0], [], []>} : vector<64x32xbf16>, vector<256x32xbf16>, vector<64x256xf32> -> vector<64x256xf32>
    %c0_2 = arith.constant 0 : index
    %c0_3 = arith.constant 0 : index
    %6 = vector.load %arg3[%c0_2, %c0_3] : memref<64x1xf32, #tpu.memory_space<vmem>>, vector<64x1xf32>
    %7 = vector.broadcast %6 : vector<64x1xf32> to vector<64x256xf32>
    %8 = arith.addf %5, %7 : vector<64x256xf32>
    %cst_4 = arith.constant 0.00999999977 : f32
    %9 = vector.broadcast %cst_4 : f32 to vector<64x256xf32>
    %10 = arith.mulf %9, %8 : vector<64x256xf32>
    %11 = arith.maximumf %8, %10 : vector<64x256xf32>
    %12 = arith.truncf %11 : vector<64x256xf32> to vector<64x256xbf16>
    %c0_5 = arith.constant 0 : index
    %c0_6 = arith.constant 0 : index
    %13 = vector.load %arg4[%c0_5, %c0_6] : memref<32x64xbf16, #tpu.memory_space<vmem>>, vector<32x64xbf16>
    %cst_7 = arith.constant dense<0.000000e+00> : vector<32x256xf32>
    %14 = tpu.matmul %13, %12, %cst_7 {dimension_numbers = #tpu.dot_dimension_numbers<[1], [0], [0], [1], [0, 0, 1, 1], [], []>} : vector<32x64xbf16>, vector<64x256xbf16>, vector<32x256xf32> -> vector<32x256xf32>
    %c0_8 = arith.constant 0 : index
    %c0_9 = arith.constant 0 : index
    %15 = vector.load %arg5[%c0_8, %c0_9] : memref<32x1xf32, #tpu.memory_space<vmem>>, vector<32x1xf32>
    %16 = vector.broadcast %15 : vector<32x1xf32> to vector<32x256xf32>
    %17 = arith.addf %14, %16 : vector<32x256xf32>
    %cst_10 = arith.constant 0.00999999977 : f32
    %18 = vector.broadcast %cst_10 : f32 to vector<32x256xf32>
    %19 = arith.mulf %18, %17 : vector<32x256xf32>
    %20 = arith.maximumf %17, %19 : vector<32x256xf32>
    %21 = arith.truncf %20 : vector<32x256xf32> to vector<32x256xbf16>
    %c0_11 = arith.constant 0 : index
    %c0_12 = arith.constant 0 : index
    %22 = vector.load %arg6[%c0_11, %c0_12] : memref<16x32xbf16, #tpu.memory_space<vmem>>, vector<16x32xbf16>
    %cst_13 = arith.constant dense<0.000000e+00> : vector<16x256xf32>
    %23 = tpu.matmul %22, %21, %cst_13 {dimension_numbers = #tpu.dot_dimension_numbers<[1], [0], [0], [1], [0, 0, 1, 1], [], []>} : vector<16x32xbf16>, vector<32x256xbf16>, vector<16x256xf32> -> vector<16x256xf32>
    %c0_14 = arith.constant 0 : index
    %c0_15 = arith.constant 0 : index
    %24 = vector.load %arg7[%c0_14, %c0_15] : memref<16x1xf32, #tpu.memory_space<vmem>>, vector<16x1xf32>
    %25 = vector.broadcast %24 : vector<16x1xf32> to vector<16x256xf32>
    %26 = arith.addf %23, %25 : vector<16x256xf32>
    %cst_16 = arith.constant 0.00999999977 : f32
    %27 = vector.broadcast %cst_16 : f32 to vector<16x256xf32>
    %28 = arith.mulf %27, %26 : vector<16x256xf32>
    %29 = arith.maximumf %26, %28 : vector<16x256xf32>
    %c0_17 = arith.constant 0 : index
    %c0_18 = arith.constant 0 : index
    %30 = vector.load %arg8[%c0_17, %c0_18] : memref<16x1xf32, #tpu.memory_space<vmem>>, vector<16x1xf32>
    %31 = vector.broadcast %30 : vector<16x1xf32> to vector<16x256xf32>
    %32 = arith.mulf %29, %31 : vector<16x256xf32>
    %cst_19 = arith.constant dense<0.000000e+00> : vector<256xf32>
    %33 = vector.multi_reduction <add>, %32, %cst_19 [0] : vector<16x256xf32> to vector<256xf32>
    %34 = vector.shape_cast %33 : vector<256xf32> to vector<1x256xf32>
    %c0_20 = arith.constant 0 : index
    %c0_21 = arith.constant 0 : index
    %35 = vector.load %arg9[%c0_20, %c0_21] : memref<1x1xf32, #tpu.memory_space<vmem>>, vector<1x1xf32>
    %36 = vector.broadcast %35 : vector<1x1xf32> to vector<1x256xf32>
    %37 = arith.addf %34, %36 : vector<1x256xf32>
    %c0_22 = arith.constant 0 : index
    %38 = arith.index_cast %0 : i32 to index
    %39 = vector.load %arg10[%c0_22, %38] : memref<1x256xf32, #tpu.memory_space<vmem>>, vector<1x256xf32>
    tpu.vector_store %arg10[%c0_22, %38], %37 {strides = array<i32>} : memref<1x256xf32, #tpu.memory_space<vmem>>, vector<1x256xf32>,
    %c1_i32 = arith.constant 1 : i32
    return
  }
  func.func @transform_0(%arg0: i32) -> (i32, i32) {
    %c0_i32 = arith.constant 0 : i32
    %c0_i32_0 = arith.constant 0 : i32
    return %arg0, %c0_i32 : i32, i32
  }
  func.func @transform_1(%arg0: i32) -> (i32, i32) {
    %c0_i32 = arith.constant 0 : i32
    %c0_i32_0 = arith.constant 0 : i32
    %c0_i32_1 = arith.constant 0 : i32
    return %c0_i32, %c0_i32_0 : i32, i32
  }
  func.func @transform_2(%arg0: i32) -> (i32, i32) {
    %c0_i32 = arith.constant 0 : i32
    %c0_i32_0 = arith.constant 0 : i32
    %c0_i32_1 = arith.constant 0 : i32
    return %c0_i32, %c0_i32_0 : i32, i32
  }
  func.func @transform_3(%arg0: i32) -> (i32, i32) {
    %c0_i32 = arith.constant 0 : i32
    %c0_i32_0 = arith.constant 0 : i32
    %c0_i32_1 = arith.constant 0 : i32
    return %c0_i32, %c0_i32_0 : i32, i32
  }
  func.func @transform_4(%arg0: i32) -> (i32, i32) {
    %c0_i32 = arith.constant 0 : i32
    %c0_i32_0 = arith.constant 0 : i32
    %c0_i32_1 = arith.constant 0 : i32
    return %c0_i32, %c0_i32_0 : i32, i32
  }
  func.func @transform_5(%arg0: i32) -> (i32, i32) {
    %c0_i32 = arith.constant 0 : i32
    %c0_i32_0 = arith.constant 0 : i32
    %c0_i32_1 = arith.constant 0 : i32
    return %c0_i32, %c0_i32_0 : i32, i32
  }
  func.func @transform_6(%arg0: i32) -> (i32, i32) {
    %c0_i32 = arith.constant 0 : i32
    %c0_i32_0 = arith.constant 0 : i32
    %c0_i32_1 = arith.constant 0 : i32
    return %c0_i32, %c0_i32_0 : i32, i32
  }
  func.func @transform_7(%arg0: i32) -> (i32, i32) {
    %c0_i32 = arith.constant 0 : i32
    %c0_i32_0 = arith.constant 0 : i32
    %c0_i32_1 = arith.constant 0 : i32
    return %c0_i32, %c0_i32_0 : i32, i32
  }
  func.func @transform_8(%arg0: i32) -> (i32, i32) {
    %c0_i32 = arith.constant 0 : i32
    %c0_i32_0 = arith.constant 0 : i32
    %c0_i32_1 = arith.constant 0 : i32
    return %c0_i32, %c0_i32_0 : i32, i32
  }
  func.func @transform_9(%arg0: i32) -> (i32, i32) {
    %c0_i32 = arith.constant 0 : i32
    %c0_i32_0 = arith.constant 0 : i32
    return %c0_i32, %arg0 : i32, i32
  }
}

</mosaic_0001>

<bundles_post_ra>
// kernel: tpu_custom_call.1
= control target key start
LH: loop header
LB: loop body
LE: loop exit
PB: predicated region body
PF: predicated region fallthrough
CT: control target
= control target key end

     0   :  { %s953_s0 = inlined_call_operand.vmem [shape: f32[256,32], index: 0, kind: input, shape index: {}]   ;;  %s954_s1 = inlined_call_operand.vmem [shape: bf16[64,32], index: 1, kind: input, shape index: {}]   ;;  %s955_s2 = inlined_call_operand.vmem [shape: f32[64,1], index: 2, kind: input, shape index: {}]   ;;  %s956_s3 = inlined_call_operand.vmem [shape: bf16[32,64], index: 3, kind: input, shape index: {}]   ;;  %s957_s4 = inlined_call_operand.vmem [shape: f32[32,1], index: 4, kind: input, shape index: {}]   ;;  %s958_s5 = inlined_call_operand.vmem [shape: bf16[16,32], index: 5, kind: input, shape index: {}]   ;;  %s959_s6 = inlined_call_operand.vmem [shape: f32[16,1], index: 6, kind: input, shape index: {}]   ;;  %s960_s7 = inlined_call_operand.vmem [shape: f32[16,1], index: 7, kind: input, shape index: {}]   ;;  %s961_s8 = inlined_call_operand.<no memory space> [shape: f32[1,1], index: 8, kind: input, shape index: {}]   ;;  %s962_s9 = inlined_call_operand.hbm [shape: f32[1,256], index: 9, kind: output, shape index: {}]  }
   0x1   :  { %v14_v0 = vstv %s961_s8 }
   0x2   :  { %15 = vst [vmem:[#allocation2] sm:$0x1] %v14_v0 }
   0x3   :  { %v52_v1 = vld [vmem:[%s953_s0 + $0x80] sm:$0xff]  ;;  %v53_v2 = vld [vmem:[%s953_s0 + $0x88] sm:$0xff]  ;;  %vm160_vm0 = vcmask 261120   ;;  %v54_v6 = vld [vmem:[%s953_s0 + $0x90] sm:$0xff]  ;;  %v686_v8 = vmov 0  }
   0x4   :  { %v36_v3 = vld [vmem:[%s953_s0] sm:$0xff]  ;;  %v76_v4 = vpack.c.bf16 %v53_v2, %v52_v1  ;;  %v37_v5 = vld [vmem:[%s953_s0 + $0x8] sm:$0xff]  ;;  %v55_v7 = vld [vmem:[%s953_s0 + $0x98] sm:$0xff]  ;;  %653 = vset.pattern.permute.xlu0 %v686_v8  ;;  %654 = vset.pattern.permute.xlu1 %v686_v8 }
   0x5   :  { %v68_v9 = vpack.c.bf16 %v37_v5, %v36_v3  ;;  %v77_v10 = vpack.c.bf16 %v55_v7, %v54_v6  ;;  %411 = vmatprep.mubr.bf16.mxu1 %v686_v8  ;;  %v38_v11 = vld [vmem:[%s953_s0 + $0x10] sm:$0xff]  ;;  %v39_v12 = vld [vmem:[%s953_s0 + $0x18] sm:$0xff]  ;;  %v56_v15 = vld [vmem:[%s953_s0 + $0xa0] sm:$0xff] }
   0x6   :  { %642 = vmatprep.subr.msk.bf16.mxu0 %vm160_vm0, %v76_v4  ;;  %v69_v14 = vpack.c.bf16 %v39_v12, %v38_v11  ;;  %v57_v16 = vld [vmem:[%s953_s0 + $0xa8] sm:$0xff]  ;;  %v40_v19 = vld [vmem:[%s953_s0 + $0x20] sm:$0xff]  ;;  %v58_v24 = vld [vmem:[%s953_s0 + $0xb0] sm:$0xff] }
   0x7   :  { %v174_v13 = vsel %vm160_vm0, %v68_v9, 0  ;;  %v78_v18 = vpack.c.bf16 %v57_v16, %v56_v15  ;;  %v41_v20 = vld [vmem:[%s953_s0 + $0x28] sm:$0xff]  ;;  %v788_v21 = vld [vmem:[%s954_s1] sm:$0xff]   ;;  %v59_v25 = vld [vmem:[%s953_s0 + $0xb8] sm:$0xff] }
   0x8   :  { %619 = vmatpush3.bf16.xpose.msra.mxu0 %v174_v13  ;;  %v177_v17 = vsel %vm160_vm0, %v69_v14, 0  ;;  %634 = vmatprep.mubr.msk.bf16.mxu0 %vm160_vm0, %v788_v21  ;;  %v70_v22 = vpack.c.bf16 %v41_v20, %v40_v19  ;;  %v92_v23 = vld [vmem:[%s955_s2] sm:$0xff]  ;;  %v94_v26 = vld [vmem:[%s955_s2 + $0x10] sm:$0xff]  ;;  %v93_v27 = vld [vmem:[%s955_s2 + $0x8] sm:$0xff]  ;;  %v79_v30 = vpack.c.bf16 %v59_v25, %v58_v24 }
   0x9   :  { %643 = vmatprep.subr.msk.bf16.mxu0 %vm160_vm0, %v77_v10  ;;  %102 = vperm.xlu0 %653, %v92_v23   ;;  %v95_v28 = vld [vmem:[%s955_s2 + $0x18] sm:$0xff]  ;;  %v42_v31 = vld [vmem:[%s953_s0 + $0x30] sm:$0xff]  ;;  %v96_v33 = vld [vmem:[%s955_s2 + $0x20] sm:$0xff] }
   0xa   :  { %112 = vperm.xlu1 %654, %v94_v26   ;;  %v180_v29 = vsel %vm160_vm0, %v70_v22, 0  ;;  %v43_v32 = vld [vmem:[%s953_s0 + $0x38] sm:$0xff]  ;;  %v97_v34 = vld [vmem:[%s955_s2 + $0x28] sm:$0xff] }
   0xb   :  { %v71_v35 = vpack.c.bf16 %v43_v32, %v42_v31 }
   0xd   :  { %107 = vperm.xlu0 %653, %v93_v27  }
   0xe   :  { %117 = vperm.xlu1 %654, %v95_v28  }
  0x10   :  { %621 = vmatpush3.bf16.xpose.msra.mxu0 %v177_v17 }
  0x11   :  { %644 = vmatprep.subr.msk.bf16.mxu0 %vm160_vm0, %v78_v18 }
  0x18   :  { %623 = vmatpush3.bf16.xpose.msra.mxu0 %v180_v29 }
  0x19   :  { %645 = vmatprep.subr.msk.bf16.mxu0 %vm160_vm0, %v79_v30 }
  0x1a   :  { %16 = vsyncpa [#allocation4], 0  ;;  %v60_v36 = vld [vmem:[%s953_s0 + $0xc0] sm:$0xff]  ;;  %v61_v37 = vld [vmem:[%s953_s0 + $0xc8] sm:$0xff]  ;;  %122 = vperm.xlu0 %653, %v96_v33   ;;  %127 = vperm.xlu1 %654, %v97_v34   ;;  %v183_v40 = vsel %vm160_vm0, %v71_v35, 0  ;;  %vm372_vm1 = vcmask 523264  }
  0x1b   :  { %v98_v38 = vld [vmem:[%s955_s2 + $0x30] sm:$0xff]  ;;  %v99_v39 = vld [vmem:[%s955_s2 + $0x38] sm:$0xff]  ;;  %v80_v41 = vpack.c.bf16 %v61_v37, %v60_v36  ;;  %v44_v42 = vld [vmem:[%s953_s0 + $0x40] sm:$0xff] }
  0x1c   :  { %v45_v43 = vld [vmem:[%s953_s0 + $0x48] sm:$0xff]  ;;  %v338_v44 = vld [vmem:[%s957_s4] sm:$0xff]  ;;  %v62_v47 = vld [vmem:[%s953_s0 + $0xd0] sm:$0xff] }
  0x1d   :  { %v339_v45 = vld [vmem:[%s957_s4 + $0x8] sm:$0xff]  ;;  %v72_v46 = vpack.c.bf16 %v45_v43, %v44_v42  ;;  %v63_v48 = vld [vmem:[%s953_s0 + $0xd8] sm:$0xff]  ;;  %v340_v49 = vld [vmem:[%s957_s4 + $0x10] sm:$0xff] }
  0x1e   :  { %132 = vperm.xlu0 %653, %v98_v38   ;;  %137 = vperm.xlu1 %654, %v99_v39   ;;  %v341_v50 = vld [vmem:[%s957_s4 + $0x18] sm:$0xff]  ;;  %v81_v52 = vpack.c.bf16 %v63_v48, %v62_v47  ;;  %v46_v53 = vld [vmem:[%s953_s0 + $0x50] sm:$0xff]  ;;  %v454_v55 = vld [vmem:[%s959_s6] sm:$0xff] }
  0x1f   :  { %v186_v51 = vsel %vm160_vm0, %v72_v46, 0  ;;  %v47_v54 = vld [vmem:[%s953_s0 + $0x58] sm:$0xff]  ;;  %v455_v56 = vld [vmem:[%s959_s6 + $0x8] sm:$0xff]  ;;  %v64_v58 = vld [vmem:[%s953_s0 + $0xe0] sm:$0xff] }
  0x20   :  { %625 = vmatpush3.bf16.xpose.msra.mxu0 %v183_v40  ;;  %v73_v57 = vpack.c.bf16 %v47_v54, %v46_v53  ;;  %v65_v59 = vld [vmem:[%s953_s0 + $0xe8] sm:$0xff]  ;;  %v525_v60 = vld [vmem:[%s960_s7] sm:$0xff]  ;;  %v66_v4 = vld [vmem:[%s953_s0 + $0xf0] sm:$0xff] }
  0x21   :  { %646 = vmatprep.subr.msk.bf16.mxu0 %vm160_vm0, %v80_v41  ;;  %v526_v61 = vld [vmem:[%s960_s7 + $0x8] sm:$0xff]  ;;  %v82_v63 = vpack.c.bf16 %v65_v59, %v64_v58  ;;  %v48_v0 = vld [vmem:[%s953_s0 + $0x60] sm:$0xff]  ;;  %v67_v5 = vld [vmem:[%s953_s0 + $0xf8] sm:$0xff] }
  0x22   :  { %344 = vperm.xlu0 %653, %v338_v44   ;;  %349 = vperm.xlu1 %654, %v339_v45   ;;  %v189_v62 = vsel %vm160_vm0, %v73_v57, 0  ;;  %v49_v1 = vld [vmem:[%s953_s0 + $0x68] sm:$0xff]  ;;  %v555_v2 = vld [vmem:[#allocation2] sm:$0x1]  ;;  %v83_v7 = vpack.c.bf16 %v67_v5, %v66_v4  ;;  %v50_v9 = vld [vmem:[%s953_s0 + $0x70] sm:$0xff] }
  0x23   :  { %v74_v3 = vpack.c.bf16 %v49_v1, %v48_v0  ;;  %v51_v10 = vld [vmem:[%s953_s0 + $0x78] sm:$0xff]  ;;  %v656_v13 = vld [vmem:[%s954_s1 + $0x8] sm:$0xff]   ;;  %v657_v14 = vld [vmem:[%s954_s1 + $0x10] sm:$0xff]  }
  0x24   :  { %v75_v11 = vpack.c.bf16 %v51_v10, %v50_v9  ;;  %v658_v15 = vld [vmem:[%s954_s1 + $0x18] sm:$0xff]  }
  0x25   :  { %v192_v6 = vsel %vm160_vm0, %v74_v3, 0 }
  0x26   :  { %354 = vperm.xlu0 %653, %v340_v49   ;;  %359 = vperm.xlu1 %654, %v341_v50   ;;  %v195_v12 = vsel %vm160_vm0, %v75_v11, 0 }
  0x28   :  { %627 = vmatpush3.bf16.xpose.msra.mxu0 %v186_v51 }
  0x29   :  { %647 = vmatprep.subr.msk.bf16.mxu0 %vm160_vm0, %v81_v52 }
  0x2a   :  { %458 = vperm.xlu0 %653, %v454_v55   ;;  %463 = vperm.xlu1 %654, %v455_v56  }
  0x2e   :  { %529 = vperm.xlu0 %653, %v525_v60   ;;  %534 = vperm.xlu1 %654, %v526_v61  }
  0x30   :  { %629 = vmatpush3.bf16.xpose.msra.mxu0 %v189_v62 }
  0x31   :  { %648 = vmatprep.subr.msk.bf16.mxu0 %vm160_vm0, %v82_v63 }
  0x32   :  { %558 = vperm.xlu0 %653, %v555_v2  }
  0x38   :  { %631 = vmatpush3.bf16.xpose.msra.mxu0 %v192_v6 }
  0x39   :  { %649 = vmatprep.subr.msk.bf16.mxu0 %vm160_vm0, %v83_v7 }
  0x40   :  { %633 = vmatpush3.bf16.xpose.msra.mxu0 %v195_v12 }
  0x47   :  { %635 = vmatmul.mubr.msk.bf16.vlgmr.msra.gmra.mrb[0].mxu0 %vm160_vm0, %v788_v21 }
  0x48   :  { %636 = vmatprep.mubr.msk.bf16.mxu0 %vm160_vm0, %v656_v13 }
  0x4f   :  { %637 = vmatmul.mubr.msk.bf16.gmra.mrb[4].mxu0 %vm160_vm0, %v656_v13 }
  0x50   :  { %638 = vmatprep.mubr.msk.bf16.mxu0 %vm160_vm0, %v657_v14 }
  0x57   :  { %639 = vmatmul.mubr.msk.bf16.gmra.mrb[8].mxu0 %vm160_vm0, %v657_v14 }
  0x58   :  { %640 = vmatprep.mubr.msk.bf16.mxu0 %vm160_vm0, %v658_v15 }
  0x5f   :  { %641 = vmatmul.mubr.msk.bf16.gmra.mrb[12].mxu0 %vm160_vm0, %v658_v15 }
  0x88   :  { %v103_v16 = vpop.permute.xlu0 %102 }
  0x89   :  { %v113_v26 = vpop.permute.xlu1 %112 }
  0x8c   :  { %v108_v20 = vpop.permute.xlu0 %107 }
  0x8d   :  { %v118_v39 = vpop.permute.xlu1 %117 }
  0x99   :  { %v123_v52 = vpop.permute.xlu0 %122  ;;  %v128_v59 = vpop.permute.xlu1 %127 }
  0x9d   :  { %v133_v9 = vpop.permute.xlu0 %132 }
 0x11a   :  { %v255_v17 = vpop.f32.mrb[0].mxu0 }
 0x11b   :  { %v256_v18 = vadd.f32 %v255_v17, %v103_v16  ;;  %v257_v19 = vpop.f32.mrb[1].mxu0 }
 0x11c   :  { %v258_v21 = vadd.f32 %v257_v19, %v103_v16  ;;  %v259_v22 = vpop.f32.mrb[2].mxu0  ;;  %v138_v16 = vpop.permute.xlu1 %137 }
 0x11d   :  { %v294_v23 = vmul.f32 0.01, %v256_v18  ;;  %v260_v24 = vadd.f32 %v259_v22, %v108_v20  ;;  %v261_v25 = vpop.f32.mrb[3].mxu0 }
 0x11e   :  { %v295_v27 = vmul.f32 0.01, %v258_v21  ;;  %v262_v28 = vadd.f32 %v261_v25, %v108_v20 }
 0x11f   :  { %v296_v29 = vmul.f32 0.01, %v260_v24  ;;  %v310_v31 = vmax.f32 %v256_v18, %v294_v23 }
 0x120   :  { %v297_v30 = vmul.f32 0.01, %v262_v28  ;;  %v311_v34 = vmax.f32 %v258_v21, %v295_v27 }
 0x121   :  { %v312_v32 = vmax.f32 %v260_v24, %v296_v29 }
 0x122   :  { %v265_v33 = vpop.f32.mrb[4].mxu0  ;;  %v313_v35 = vmax.f32 %v262_v28, %v297_v30 }
 0x123   :  { %v266_v36 = vadd.f32 %v265_v33, %v113_v26  ;;  %v267_v37 = vpop.f32.mrb[5].mxu0  ;;  %v326_v38 = vpack.c.bf16 %v312_v32, %v310_v31  ;;  %v659_v33 = vld [vmem:[%s956_s3] sm:$0xff]  }
 0x124   :  { %v268_v40 = vadd.f32 %v267_v37, %v113_v26  ;;  %v269_v41 = vpop.f32.mrb[6].mxu0  ;;  %v327_v42 = vpack.c.bf16 %v313_v35, %v311_v34  ;;  %v660_v34 = vld [vmem:[%s956_s3 + $0x8] sm:$0xff]   ;;  %v345_v35 = vpop.permute.xlu0 %344 }
 0x125   :  { %v298_v43 = vmul.f32 0.01, %v266_v36  ;;  %v270_v44 = vadd.f32 %v269_v41, %v118_v39  ;;  %v271_v45 = vpop.f32.mrb[7].mxu0 }
 0x126   :  { %v299_v46 = vmul.f32 0.01, %v268_v40  ;;  %v272_v47 = vadd.f32 %v271_v45, %v118_v39  ;;  %379 = vmatprep.subr.bf16.mxu1 %v327_v42  ;;  %v350_v39 = vpop.permute.xlu1 %349 }
 0x127   :  { %v300_v48 = vmul.f32 0.01, %v270_v44  ;;  %380 = vmatpush1.bf16.msra.mxu1 %v326_v38  ;;  %v314_v50 = vmax.f32 %v266_v36, %v298_v43 }
 0x128   :  { %v301_v49 = vmul.f32 0.01, %v272_v47  ;;  %v315_v53 = vmax.f32 %v268_v40, %v299_v46 }
 0x129   :  { %v316_v51 = vmax.f32 %v270_v44, %v300_v48 }
 0x12a   :  { %v317_v54 = vmax.f32 %v272_v47, %v301_v49  ;;  %v275_v55 = vpop.f32.mrb[8].mxu0 }
 0x12b   :  { %v276_v56 = vadd.f32 %v275_v55, %v123_v52  ;;  %v277_v57 = vpop.f32.mrb[9].mxu0  ;;  %v328_v58 = vpack.c.bf16 %v316_v51, %v314_v50  ;;  %v355_v51 = vpop.permute.xlu0 %354 }
 0x12c   :  { %v278_v60 = vadd.f32 %v277_v57, %v123_v52  ;;  %v279_v61 = vpop.f32.mrb[10].mxu0  ;;  %v329_v62 = vpack.c.bf16 %v317_v54, %v315_v53  ;;  %v360_v57 = vpop.permute.xlu1 %359 }
 0x12d   :  { %v302_v63 = vmul.f32 0.01, %v276_v56  ;;  %v280_v0 = vadd.f32 %v279_v61, %v128_v59  ;;  %v281_v1 = vpop.f32.mrb[11].mxu0 }
 0x12e   :  { %v303_v2 = vmul.f32 0.01, %v278_v60  ;;  %v282_v3 = vadd.f32 %v281_v1, %v128_v59  ;;  %381 = vmatprep.subr.bf16.mxu1 %v329_v62 }
 0x12f   :  { %v304_v4 = vmul.f32 0.01, %v280_v0  ;;  %382 = vmatpush1.bf16.msra.mxu1 %v328_v58  ;;  %v318_v6 = vmax.f32 %v276_v56, %v302_v63 }
 0x130   :  { %v305_v5 = vmul.f32 0.01, %v282_v3  ;;  %v319_v10 = vmax.f32 %v278_v60, %v303_v2 }
 0x131   :  { %v320_v7 = vmax.f32 %v280_v0, %v304_v4 }
 0x132   :  { %v321_v11 = vmax.f32 %v282_v3, %v305_v5  ;;  %v285_v12 = vpop.f32.mrb[12].mxu0 }
 0x133   :  { %v286_v13 = vadd.f32 %v285_v12, %v133_v9  ;;  %v287_v14 = vpop.f32.mrb[13].mxu0  ;;  %v330_v15 = vpack.c.bf16 %v320_v7, %v318_v6  ;;  %v459_v12 = vpop.permute.xlu0 %458 }
 0x134   :  { %v288_v17 = vadd.f32 %v287_v14, %v133_v9  ;;  %v289_v18 = vpop.f32.mrb[14].mxu0  ;;  %v331_v19 = vpack.c.bf16 %v321_v11, %v319_v10  ;;  %v661_v11 = vld [vmem:[%s958_s5] sm:$0xff]   ;;  %s688_s5 = smov [#allocation3]  }
 0x135   :  { %v306_v20 = vmul.f32 0.01, %v286_v13  ;;  %v290_v21 = vadd.f32 %v289_v18, %v138_v16  ;;  %v291_v22 = vpop.f32.mrb[15].mxu0  ;;  %s596_s23 = sshll.u32 %s688_s5, 4  ;;  %s597_s23 = int_to_ptr.vmem [resolvable:$true] %s596_s23 }
 0x136   :  { %v307_v23 = vmul.f32 0.01, %v288_v17  ;;  %v292_v24 = vadd.f32 %v291_v22, %v138_v16  ;;  %383 = vmatprep.subr.bf16.mxu1 %v331_v19  ;;  %v464_v16 = vpop.permute.xlu1 %463  ;;  %s662_s24 = scalar_lea.vmem %s597_s23, 32  ;;  %p667_p1 = scmp.lt.s32.totalorder %s597_s23, %s597_s23 }
 0x137   :  { %v308_v25 = vmul.f32 0.01, %v290_v21  ;;  %384 = vmatpush1.bf16.msra.mxu1 %v330_v15  ;;  %v322_v27 = vmax.f32 %v286_v13, %v306_v20  ;;  %p663_p0 = scmp.ne.s32.totalorder %s597_s23, %s662_s24  ;;  %p668_p2 = scmp.lt.s32.totalorder %s662_s24, %s662_s24 }
 0x138   :  { %v309_v26 = vmul.f32 0.01, %v292_v24  ;;  %v323_v29 = vmax.f32 %v288_v17, %v307_v23 }
 0x139   :  { %v324_v28 = vmax.f32 %v290_v21, %v308_v25  ;;  %p669_p3 = por %p668_p2, %p667_p1 }
 0x13a   :  { %v325_v30 = vmax.f32 %v292_v24, %v309_v26 }
 0x13b   :  { %v332_v31 = vpack.c.bf16 %v324_v28, %v322_v27  ;;  %p670_p4 = pnand %p669_p3, %p663_p0 }
 0x13c   :  { %v333_v32 = vpack.c.bf16 %v325_v30, %v323_v29  ;;  %v530_v29 = vpop.permute.xlu0 %529  ;;  %v535_v30 = vpop.permute.xlu1 %534 }
 0x13e   :  { %385 = vmatprep.subr.bf16.mxu1 %v333_v32 }
 0x13f   :  { %386 = vmatpush1.bf16.msra.mxu1 %v332_v31 }
 0x142   :  { %614 = vmatmul.mubr.msk.bf16.vlgmr.msra.gmra.mrb[0].mxu1 %vm372_vm1, %v659_v33 }
 0x143   :  { %421 = vmatprep.mubr.bf16.mxu1 %v686_v8 }
 0x14a   :  { %615 = vmatmul.mubr.msk.bf16.gmra.mrb[4].mxu1 %vm372_vm1, %v660_v34 }
 0x14b   :  { %506 = vmatprep.mubr.bf16.mxu1 %v686_v8 }
 0x215   :  { %v413_v36 = vpop.f32.mrb[0].mxu1 }
 0x216   :  { %v414_v37 = vadd.f32 %v413_v36, %v345_v35  ;;  %v415_v38 = vpop.f32.mrb[1].mxu1  ;;  %v561_v36 = vlaneseq }
 0x217   :  { %v416_v40 = vadd.f32 %v415_v38, %v345_v35  ;;  %v417_v41 = vpop.f32.mrb[2].mxu1 }
 0x218   :  { %v432_v42 = vmul.f32 0.01, %v414_v37  ;;  %v418_v43 = vadd.f32 %v417_v41, %v350_v39  ;;  %v419_v44 = vpop.f32.mrb[3].mxu1  ;;  %v562_v41 = vshrl.u32 %v561_v36, 7  ;;  %vm587_vm2 = vcmp.lt.s32.totalorder %v561_v36, 256 }
 0x219   :  { %v433_v45 = vmul.f32 0.01, %v416_v40  ;;  %v420_v46 = vadd.f32 %v419_v44, %v350_v39 }
 0x21a   :  { %v434_v47 = vmul.f32 0.01, %v418_v43  ;;  %v440_v49 = vmax.f32 %v414_v37, %v432_v42 }
 0x21b   :  { %v435_v48 = vmul.f32 0.01, %v420_v46  ;;  %v441_v52 = vmax.f32 %v416_v40, %v433_v45 }
 0x21c   :  { %v442_v50 = vmax.f32 %v418_v43, %v434_v47 }
 0x21d   :  { %v443_v53 = vmax.f32 %v420_v46, %v435_v48  ;;  %v423_v8 = vpop.f32.mrb[4].mxu1  ;;  %v687_v46 = vmov 1966171168   ;;  %v563_v48 = vsub.s32 0, %v562_v41 }
 0x21e   :  { %v448_v54 = vpack.c.bf16 %v442_v50, %v440_v49  ;;  %v424_v55 = vadd.f32 %v423_v8, %v355_v51  ;;  %v425_v56 = vpop.f32.mrb[5].mxu1  ;;  %v571_v47 = vunpack.c.l.s4 %v687_v46  ;;  %v559_v50 = vpop.permute.xlu0 %558 }
 0x21f   :  { %v426_v58 = vadd.f32 %v425_v56, %v355_v51  ;;  %v427_v59 = vpop.f32.mrb[6].mxu1  ;;  %v449_v60 = vpack.c.bf16 %v443_v53, %v441_v52 }
 0x220   :  { %v436_v61 = vmul.f32 0.01, %v424_v55  ;;  %v428_v62 = vadd.f32 %v427_v59, %v360_v57  ;;  %v429_v63 = vpop.f32.mrb[7].mxu1  ;;  %v572_v8 = vunpack.c.0.s8 %v571_v47 }
 0x221   :  { %v437_v0 = vmul.f32 0.01, %v426_v58  ;;  %v430_v1 = vadd.f32 %v429_v63, %v360_v57  ;;  %474 = vmatprep.subr.bf16.mxu1 %v449_v60 }
 0x222   :  { %v438_v2 = vmul.f32 0.01, %v428_v62  ;;  %475 = vmatpush1.bf16.msra.mxu1 %v448_v54  ;;  %v444_v4 = vmax.f32 %v424_v55, %v436_v61  ;;  %v564_v54 = vrot.slane %v559_v50, %v563_v48  ;;  %v575_v59 = vsub.s32 %v572_v8, %v562_v41 }
 0x223   :  { %v439_v3 = vmul.f32 0.01, %v430_v1  ;;  %v445_v6 = vmax.f32 %v426_v58, %v437_v0 }
 0x224   :  { %v446_v5 = vmax.f32 %v428_v62, %v438_v2 }
 0x225   :  { %v447_v7 = vmax.f32 %v430_v1, %v439_v3 }
 0x226   :  { %v450_v9 = vpack.c.bf16 %v446_v5, %v444_v4 }
 0x227   :  { %v451_v10 = vpack.c.bf16 %v447_v7, %v445_v6 }
 0x229   :  { %476 = vmatprep.subr.bf16.mxu1 %v451_v10 }
 0x22a   :  { %477 = vmatpush1.bf16.msra.mxu1 %v450_v9 }
 0x22d   :  { %617 = vmatmul.mubr.msk.bf16.vlgmr.msra.gmra.mrb[8].mxu1 %vm160_vm0, %v661_v11 }
 0x300   :  { %v508_v13 = vpop.f32.mrb[8].mxu1 }
 0x301   :  { %v509_v14 = vadd.f32 %v508_v13, %v459_v12  ;;  %v510_v15 = vpop.f32.mrb[9].mxu1 }
 0x302   :  { %v511_v17 = vadd.f32 %v510_v15, %v459_v12  ;;  %v512_v18 = vpop.f32.mrb[10].mxu1 }
 0x303   :  { %v517_v19 = vmul.f32 0.01, %v509_v14  ;;  %v513_v20 = vadd.f32 %v512_v18, %v464_v16  ;;  %v514_v21 = vpop.f32.mrb[11].mxu1 }
 0x304   :  { %v518_v22 = vmul.f32 0.01, %v511_v17  ;;  %v515_v23 = vadd.f32 %v514_v21, %v464_v16 }
 0x305   :  { %v521_v24 = vmax.f32 %v509_v14, %v517_v19  ;;  %v519_v25 = vmul.f32 0.01, %v513_v20 }
 0x306   :  { %v522_v26 = vmax.f32 %v511_v17, %v518_v22  ;;  %v520_v27 = vmul.f32 0.01, %v515_v23 }
 0x307   :  { %v523_v28 = vmax.f32 %v513_v20, %v519_v25  ;;  %v537_v32 = vmul.f32 %v530_v29, %v521_v24 }
 0x308   :  { %v524_v31 = vmax.f32 %v515_v23, %v520_v27  ;;  %v538_v34 = vmul.f32 %v530_v29, %v522_v26 }
 0x309   :  { %v539_v33 = vmul.f32 %v535_v30, %v523_v28 }
 0x30a   :  { %v540_v35 = vmul.f32 %v535_v30, %v524_v31 }
 0x30b   :  { %v541_v37 = vadd.f32 %v539_v33, %v537_v32 }
 0x30c   :  { %v548_v38 = vadd.f32 %v540_v35, %v538_v34 }
 0x30d   :  { %v542_v39 = vrot.slane %v541_v37, 4 }
 0x30e   :  { %v549_v40 = vrot.slane %v548_v38, 4 }
 0x30f   :  { %v543_v42 = vadd.f32 %v542_v39, %v541_v37 }
 0x310   :  { %v550_v43 = vadd.f32 %v549_v40, %v548_v38 }
 0x311   :  { %v544_v44 = vrot.slane %v543_v42, 2 }
 0x312   :  { %v551_v45 = vrot.slane %v550_v43, 2 }
 0x313   :  { %v545_v49 = vadd.f32 %v544_v44, %v543_v42 }
 0x314   :  { %v552_v51 = vadd.f32 %v551_v45, %v550_v43 }
 0x315   :  { %v546_v52 = vrot.slane %v545_v49, 1 }
 0x316   :  { %v553_v53 = vrot.slane %v552_v51, 1 }
 0x317   :  { %v547_v55 = vadd.f32 %v546_v52, %v545_v49 }
 0x318   :  { %v554_v56 = vadd.f32 %v553_v53, %v552_v51 }
 0x319   :  { %v565_v57 = vadd.f32 %v564_v54, %v547_v55 }
 0x31a   :  { %v566_v58 = vadd.f32 %v564_v54, %v554_v56 }
 0x31c   :  { %v569_v60 = vcombine.low %v565_v57, %v566_v58 }
 0x31e   :  { %v576_v61 = vrot.slane %v569_v60, %v575_v59 }
 0x320   :  { %v583_v62 = vrot.slane %v576_v61, %v575_v59 }
 0x322   :  { %589 = vst.msk [vmem:[#allocation3] sm:$0x3] %vm587_vm2, %v583_v62 }
 0x323   :  { %673 = shalt.err (!%p670_p4)
}
 0x324   :  { %s674_s2 = scalar_lea.hbm %s962_s9, 32 }
 0x325   :  { %p675_p5 = scmp.ne.s32.totalorder %s962_s9, %s674_s2  ;;  %p678_p6 = scmp.lt.u32.totalorder %s674_s2, %s962_s9 }
 0x327   :  { %p680_p7 = pnand %p678_p6, %p675_p5 }
 0x329   :  { %683 = shalt.err (!%p680_p7)
}
 0x32a   :  { %599 = dma.vmem_to_hbm [thread:$0]  %s597_s23, 32, %s962_s9, [#allocation4]  }
 0x32b   :  { %684 = dma.done.wait [#allocation4], 32  }
 0x32c   :  { %685 = vsyncadd [#allocation4], 4294967264 }
 0x32d   :  { %603 = vsyncpa [#allocation4], 1 }

</bundles_post_ra>
